<compile_context>
chip_gen: v7x
topology: tpu7x:2x2x1
jax: 0.10.0
libtpu: 0.0.40
codegen_flags: <defaults>
</compile_context>

<pallas_src>
import functools

import jax
import jax.numpy as jnp
from jax.experimental import pallas as pl
from jax.experimental.pallas import tpu as pltpu


# Target bytes for the double-buffered x input + output tiles (2 in + 2 out).
_DEFAULT_VMEM_BUDGET = 24 * 1024 * 1024
# Scoped VMEM limit handed to Mosaic.  Above v5e's 16 MiB default, below
# v7x's 64 MiB physical VMEM.
_VMEM_LIMIT_BYTES = 48 * 1024 * 1024


# ----------------------------- kernels --------------------------------------


def _se_fused_kernel(x_ref, w1_ref, w2_ref, o_ref, *, inv_hw):
    """Fully fused SE for a (Bt, HW, C) tile: pool -> gate -> scale."""
    # Squeeze: f32 accumulation only inside the reduction (no f32 tile copy).
    pooled = jnp.sum(x_ref[...], axis=1, dtype=jnp.float32) * inv_hw  # (Bt, C)

    # Excitation: Linear -> ReLU -> Linear -> Sigmoid (tiny matmuls, M=Bt).
    h = jnp.maximum(
        jnp.dot(pooled, w1_ref[...], preferred_element_type=jnp.float32), 0.0)
    gate = jax.nn.sigmoid(
        jnp.dot(h, w2_ref[...], preferred_element_type=jnp.float32))

    # Scale: cast the (Bt, C) gate ONCE to the input dtype; the broadcast over
    # HW is along the sublane axis, and the multiply/store stay narrow.
    gate = gate.astype(o_ref.dtype)[:, None, :]          # (Bt, 1, C)
    o_ref[...] = x_ref[...] * gate


def _se_pool_gate_kernel(x_ref, w1_ref, w2_ref, y_ref, acc_ref,
                         *, hw, tile_hw, inv_hw):
    """Pass 1 of the HW-tiled fallback: pooled sum over HW tiles, then gate."""
    t = pl.program_id(1)

    @pl.when(t == 0)
    def _():
        acc_ref[...] = jnp.zeros_like(acc_ref)

    x = x_ref[...]                                        # (1, tile_hw, C)
    if hw % tile_hw != 0:
        # Mask rows of the (possibly OOB-padded) last tile.
        row = jax.lax.broadcasted_iota(jnp.int32, x.shape, 1)
        x = jnp.where(t * tile_hw + row < hw, x, jnp.zeros_like(x))
    acc_ref[...] += jnp.sum(x, axis=1, keepdims=True, dtype=jnp.float32)

    @pl.when(t == pl.num_programs(1) - 1)
    def _():
        pooled = acc_ref[...][:, 0, :] * inv_hw           # (1, C) f32
        h = jnp.maximum(
            jnp.dot(pooled, w1_ref[...], preferred_element_type=jnp.float32),
            0.0)
        gate = jax.nn.sigmoid(
            jnp.dot(h, w2_ref[...], preferred_element_type=jnp.float32))
        y_ref[...] = gate[:, None, :].astype(y_ref.dtype)  # (1, 1, C)


def _se_scale_kernel(x_ref, g_ref, o_ref):
    """Pass 2 of the HW-tiled fallback: elementwise channel scale."""
    o_ref[...] = x_ref[...] * g_ref[...]                  # (1,T,C)*(1,1,C)


# --------------------------- tiling helpers ----------------------------------


def _choose_batch_tile(b, slab_bytes, budget_bytes):
    """Largest Bt (divisor of b) whose 2x(in)+2x(out) tiles fit the budget.

    Returns None if even Bt=1 does not fit (caller uses the HW-tiled path).
    Keeps the grid >= 2 steps when b >= 2 so both v7x TensorCores get work.
    """
    if 4 * slab_bytes > budget_bytes:
        return None
    cap = 1 if b == 1 else b // 2
    best = 1
    for bt in range(1, cap + 1):
        if b % bt == 0 and 4 * bt * slab_bytes <= budget_bytes:
            best = bt
    return best


def _choose_hw_tile(hw, c, itemsize, budget_bytes):
    """Sublane-aligned HW tile for the two-pass fallback."""
    t = budget_bytes // (4 * c * itemsize)
    t = max(8, (t // 8) * 8)
    t = min(t, max(8, (hw // 8) * 8))
    return int(t)


# ------------------------------ wrapper --------------------------------------


def se_block(x_nchw, w1, w2, *, vmem_budget_bytes=_DEFAULT_VMEM_BUDGET):
    """x_nchw: (B, C, H, W); w1: (C, C//r); w2: (C//r, C). Returns (B, C, H, W)."""
    B, C, H, W = x_nchw.shape
    HW = H * W
    Cr = w1.shape[1]
    assert w1.shape == (C, Cr) and w2.shape == (Cr, C)

    itemsize = jnp.dtype(x_nchw.dtype).itemsize
    inv_hw = 1.0 / float(HW)

    # Lane-dense layout: channels on the lane (last) axis.
    x_t = x_nchw.reshape(B, C, HW).transpose(0, 2, 1)     # (B, HW, C)

    slab_bytes = HW * C * itemsize
    bt = _choose_batch_tile(B, slab_bytes, vmem_budget_bytes)

    if bt is not None:
        # ---- fused single-pass path: one HBM read + one write of x ----
        kernel = functools.partial(_se_fused_kernel, inv_hw=inv_hw)
        out_t = pl.pallas_call(
            kernel,
            out_shape=jax.ShapeDtypeStruct((B, HW, C), x_nchw.dtype),
            grid_spec=pltpu.PrefetchScalarGridSpec(
                num_scalar_prefetch=0,
                grid=(B // bt,),
                in_specs=[
                    pl.BlockSpec((bt, HW, C), lambda b: (b, 0, 0)),
                    pl.BlockSpec((C, Cr), lambda b: (0, 0)),
                    pl.BlockSpec((Cr, C), lambda b: (0, 0)),
                ],
                out_specs=pl.BlockSpec((bt, HW, C), lambda b: (b, 0, 0)),
            ),
            compiler_params=pltpu.CompilerParams(
                dimension_semantics=("parallel",),
                vmem_limit_bytes=_VMEM_LIMIT_BYTES,
            ),
        )(x_t, w1, w2)
    else:
        # ---- two-pass HW-tiled fallback (slab does not fit VMEM budget) ----
        tile_hw = _choose_hw_tile(HW, C, itemsize, vmem_budget_bytes)
        n_tiles = -(-HW // tile_hw)

        pool_kernel = functools.partial(
            _se_pool_gate_kernel, hw=HW, tile_hw=tile_hw, inv_hw=inv_hw)
        gate = pl.pallas_call(
            pool_kernel,
            out_shape=jax.ShapeDtypeStruct((B, 1, C), x_nchw.dtype),
            grid_spec=pltpu.PrefetchScalarGridSpec(
                num_scalar_prefetch=0,
                grid=(B, n_tiles),
                in_specs=[
                    pl.BlockSpec((1, tile_hw, C), lambda b, t: (b, t, 0)),
                    pl.BlockSpec((C, Cr), lambda b, t: (0, 0)),
                    pl.BlockSpec((Cr, C), lambda b, t: (0, 0)),
                ],
                out_specs=pl.BlockSpec((1, 1, C), lambda b, t: (b, 0, 0)),
                scratch_shapes=[pltpu.VMEM((1, 1, C), jnp.float32)],
            ),
            compiler_params=pltpu.CompilerParams(
                dimension_semantics=("parallel", "arbitrary"),
                vmem_limit_bytes=_VMEM_LIMIT_BYTES,
            ),
        )(x_t, w1, w2)

        out_t = pl.pallas_call(
            _se_scale_kernel,
            out_shape=jax.ShapeDtypeStruct((B, HW, C), x_nchw.dtype),
            grid_spec=pltpu.PrefetchScalarGridSpec(
                num_scalar_prefetch=0,
                grid=(B, n_tiles),
                in_specs=[
                    pl.BlockSpec((1, tile_hw, C), lambda b, t: (b, t, 0)),
                    pl.BlockSpec((1, 1, C), lambda b, t: (b, 0, 0)),
                ],
                out_specs=pl.BlockSpec((1, tile_hw, C), lambda b, t: (b, t, 0)),
            ),
            compiler_params=pltpu.CompilerParams(
                dimension_semantics=("parallel", "parallel"),
                vmem_limit_bytes=_VMEM_LIMIT_BYTES,
            ),
        )(x_t, gate)

    return out_t.transpose(0, 2, 1).reshape(B, C, H, W)


def se_block_reference(x_nchw, w1, w2):
    """Pure-JAX reference matching the PyTorch forward."""
    pooled = jnp.mean(x_nchw, axis=(2, 3))                  # (B, C)
    h = jnp.maximum(pooled @ w1, 0.0)                       # (B, C//r)
    y = jax.nn.sigmoid(h @ w2)                              # (B, C)
    return x_nchw * y[:, :, None, None]


if __name__ == "__main__":
    # channels // reduction must be >= 1 (reduction=16 -> C=32, hidden=2).
    B, C, H, W = 2, 32, 16, 16
    reduction = 16
    Cr = C // reduction

    key = jax.random.PRNGKey(0)
    kx, k1, k2, kx2 = jax.random.split(key, 4)

    x = jax.random.normal(kx, (B, C, H, W), dtype=jnp.float32)

    # nn.Linear(C, Cr, bias=False) has weight (Cr, C); we store its transpose
    # (C, Cr) so the kernel computes pooled @ W1 == pooled @ weight.T.
    bound1 = 1.0 / jnp.sqrt(C)
    bound2 = 1.0 / jnp.sqrt(Cr)
    w1 = jax.random.uniform(k1, (C, Cr), jnp.float32, -bound1, bound1)
    w2 = jax.random.uniform(k2, (Cr, C), jnp.float32, -bound2, bound2)

    # Fused single-pass path.
    out = jax.block_until_ready(se_block(x, w1, w2))
    ref = se_block_reference(x, w1, w2)
    assert out.shape == (B, C, H, W)
    assert jnp.allclose(out, ref, atol=1e-5, rtol=1e-5), "fused path mismatch"

    # Exercise the two-pass HW-tiled fallback (forced via a tiny VMEM budget),
    # including the masked remainder path (HW = 14*14 = 196 % tile != 0).
    x2 = jax.random.normal(kx2, (B, C, 14, 14), dtype=jnp.float32)
    out2 = jax.block_until_ready(
        se_block(x2, w1, w2, vmem_budget_bytes=64 * 1024))
    ref2 = se_block_reference(x2, w1, w2)
    assert jnp.allclose(out2, ref2, atol=1e-5, rtol=1e-5), "tiled path mismatch"

    print("KERNEL_OK")
</pallas_src>

<mosaic_0001>
module attributes {stable_mosaic.version = 11 : i64} {
  func.func @_se_fused_kernel(%arg0: i32, %arg1: memref<1x256x32xf32, #tpu.memory_space<vmem>>, %arg2: memref<32x2xf32, #tpu.memory_space<vmem>>, %arg3: memref<2x32xf32, #tpu.memory_space<vmem>>, %arg4: memref<1x256x32xf32, #tpu.memory_space<vmem>>) attributes {dimension_semantics = [#tpu.dimension_semantics<parallel>], iteration_bounds = array<i64: 2>, scalar_prefetch = 0 : i64, scratch_operands = 0 : i64, tpu.core_type = #tpu.core_type<tc>, window_params = [{transform_indices = @transform_0, window_bounds = array<i64: 1, 256, 32>}, {pipeline_mode = #tpu.pipeline_mode<synchronous>, transform_indices = @transform_1, window_bounds = array<i64: 32, 2>}, {pipeline_mode = #tpu.pipeline_mode<synchronous>, transform_indices = @transform_2, window_bounds = array<i64: 2, 32>}, {transform_indices = @transform_3, window_bounds = array<i64: 1, 256, 32>}]} {
    %c0 = arith.constant 0 : index
    %c0_0 = arith.constant 0 : index
    %c0_1 = arith.constant 0 : index
    %0 = vector.load %arg1[%c0, %c0_0, %c0_1] : memref<1x256x32xf32, #tpu.memory_space<vmem>>, vector<1x256x32xf32>
    %cst = arith.constant dense<0.000000e+00> : vector<1x32xf32>
    %1 = vector.multi_reduction <add>, %0, %cst [1] : vector<1x256x32xf32> to vector<1x32xf32>
    %cst_2 = arith.constant 3.906250e-03 : f32
    %2 = vector.broadcast %cst_2 : f32 to vector<1x32xf32>
    %3 = arith.mulf %1, %2 : vector<1x32xf32>
    %c0_3 = arith.constant 0 : index
    %c0_4 = arith.constant 0 : index
    %4 = vector.load %arg2[%c0_3, %c0_4] : memref<32x2xf32, #tpu.memory_space<vmem>>, vector<32x2xf32>
    %cst_5 = arith.constant dense<0.000000e+00> : vector<1x2xf32>
    %5 = tpu.matmul %3, %4, %cst_5 {dimension_numbers = #tpu.dot_dimension_numbers<[1], [0], [0], [1], [0, 0, 1, 1], [], []>} : vector<1x32xf32>, vector<32x2xf32>, vector<1x2xf32> -> vector<1x2xf32>
    %cst_6 = arith.constant 0.000000e+00 : f32
    %6 = vector.broadcast %cst_6 : f32 to vector<1x2xf32>
    %7 = arith.maximumf %5, %6 : vector<1x2xf32>
    %c0_7 = arith.constant 0 : index
    %c0_8 = arith.constant 0 : index
    %8 = vector.load %arg3[%c0_7, %c0_8] : memref<2x32xf32, #tpu.memory_space<vmem>>, vector<2x32xf32>
    %cst_9 = arith.constant dense<0.000000e+00> : vector<1x32xf32>
    %9 = tpu.matmul %7, %8, %cst_9 {dimension_numbers = #tpu.dot_dimension_numbers<[1], [0], [0], [1], [0, 0, 1, 1], [], []>} : vector<1x2xf32>, vector<2x32xf32>, vector<1x32xf32> -> vector<1x32xf32>
    %10 = arith.negf %9 : vector<1x32xf32>
    %11 = math.exp %10 : vector<1x32xf32>
    %cst_10 = arith.constant 1.000000e+00 : f32
    %12 = vector.broadcast %cst_10 : f32 to vector<1x32xf32>
    %13 = arith.addf %12, %11 : vector<1x32xf32>
    %14 = arith.divf %12, %13 : vector<1x32xf32>
    %15 = vector.shape_cast %14 : vector<1x32xf32> to vector<1x1x32xf32>
    %c0_11 = arith.constant 0 : index
    %c0_12 = arith.constant 0 : index
    %c0_13 = arith.constant 0 : index
    %16 = vector.load %arg1[%c0_11, %c0_12, %c0_13] : memref<1x256x32xf32, #tpu.memory_space<vmem>>, vector<1x256x32xf32>
    %17 = vector.broadcast %15 : vector<1x1x32xf32> to vector<1x256x32xf32>
    %18 = arith.mulf %16, %17 : vector<1x256x32xf32>
    %c0_14 = arith.constant 0 : index
    %c0_15 = arith.constant 0 : index
    %c0_16 = arith.constant 0 : index
    %19 = vector.load %arg4[%c0_14, %c0_15, %c0_16] : memref<1x256x32xf32, #tpu.memory_space<vmem>>, vector<1x256x32xf32>
    tpu.vector_store %arg4[%c0_14, %c0_15, %c0_16], %18 {strides = array<i32>} : memref<1x256x32xf32, #tpu.memory_space<vmem>>, vector<1x256x32xf32>,
    return
  }
  func.func @transform_0(%arg0: i32) -> (i32, i32, i32) {
    %c0_i32 = arith.constant 0 : i32
    %c0_i32_0 = arith.constant 0 : i32
    %c0_i32_1 = arith.constant 0 : i32
    return %arg0, %c0_i32, %c0_i32_0 : i32, i32, i32
  }
  func.func @transform_1(%arg0: i32) -> (i32, i32) {
    %c0_i32 = arith.constant 0 : i32
    %c0_i32_0 = arith.constant 0 : i32
    %c0_i32_1 = arith.constant 0 : i32
    return %c0_i32, %c0_i32_0 : i32, i32
  }
  func.func @transform_2(%arg0: i32) -> (i32, i32) {
    %c0_i32 = arith.constant 0 : i32
    %c0_i32_0 = arith.constant 0 : i32
    %c0_i32_1 = arith.constant 0 : i32
    return %c0_i32, %c0_i32_0 : i32, i32
  }
  func.func @transform_3(%arg0: i32) -> (i32, i32, i32) {
    %c0_i32 = arith.constant 0 : i32
    %c0_i32_0 = arith.constant 0 : i32
    %c0_i32_1 = arith.constant 0 : i32
    return %arg0, %c0_i32, %c0_i32_0 : i32, i32, i32
  }
}

</mosaic_0001>

<bundles_post_ra>
// kernel: tpu_custom_call.1
= control target key start
LH: loop header
LB: loop body
LE: loop exit
PB: predicated region body
PF: predicated region fallthrough
CT: control target
= control target key end

     0   :  { %s652_s12 = smov 0   ;;  %s952_s0 = inlined_call_operand.vmem [shape: f32[2,256,32], index: 0, kind: input, shape index: {}]   ;;  %s953_s1 = inlined_call_operand.vmem [shape: f32[32,2], index: 1, kind: input, shape index: {}]   ;;  %s954_s2 = inlined_call_operand.vmem [shape: f32[2,32], index: 2, kind: input, shape index: {}]   ;;  %s955_s3 = inlined_call_operand.vmem [shape: f32[2,256,32], index: 3, kind: output, shape index: {}]  }
   0x1 LB: > { %s560_s13 = sadd.s32 4294967295, %s627_s12   ;;  %p564_p0 = scmp.ge.s32.totalorder %s627_s12, 1  ;;  %s627_s12 = sphi %s652_s12, %s13_s12  }
   0x2   : > { %p137_p1 = scmp.lt.s32.totalorder %s627_s12, 3 }
   0x4   : > { %p138_p2 = pnand %p564_p0, %p137_p1 }
   0x5   : > { %v274_v0 = vld [vmem:[%s953_s1] sm:$0xff] (!%p138_p2)  ;;  %v275_v1 = vld [vmem:[%s953_s1 + $0x8] sm:$0xff] (!%p138_p2)  ;;  %v276_v2 = vld [vmem:[%s953_s1 + $0x10] sm:$0xff] (!%p138_p2)  ;;  %v629_v3 = vmov (!%p138_p2), 0.0|0.0   ;;  %vm630_vm0 = vmmov (!%p138_p2), 0   ;;  %v631_v6 = vmov (!%p138_p2), 0.0  }
   0x6   : > { %141 = sbr.rel (%p138_p2) target bundleno = 567 (0x237), region = 32  ;;  %600 = vmatprep.subr.bf16.mxu0 (!%p138_p2), %v629_v3  ;;  %v601_v4 = vpack.c.bf16 (!%p138_p2), %v275_v1, %v274_v0  ;;  %v277_v5 = vld [vmem:[%s953_s1 + $0x18] sm:$0xff] (!%p138_p2)  ;;  %592 = vmatprep.mubr.msk.f32.mxu0 (!%p138_p2), %vm630_vm0, %v631_v6  ;;  %p161_p3 = scmp.lt.s32.totalorder (!%p138_p2), %s560_s13, 1  ;;  %vm203_vm1 = vcmask (!%p138_p2), 261120   ;;  %vm357_vm2 = vcmask (!%p138_p2), 1041408   ;;  %vm353_vm3 = vcmask (!%p138_p2), 15360  }
   0x7   : > { %595 = vmatprep.subr.mxu1 (!%p138_p2), %v631_v6  ;;  %597 = vmatprep.mubr.msk.f32.mxu1 (!%p138_p2), %vm630_vm0, %v631_v6  ;;  %v604_v7 = vpack.c.bf16 (!%p138_p2), %v277_v5, %v276_v2 }
   0x8   : > { %602 = vmatpush3.bf16.msra.mxu0 (!%p138_p2), %v601_v4 }
   0x9   : > { %603 = vmatprep.subr.bf16.mxu0 (!%p138_p2), %v629_v3 }
   0xc   : > { %605 = vmatpush3.bf16.msra.mxu0 (!%p138_p2), %v604_v7 }
   0xd   : > { %s957_s13 = smov (!%p161_p3, %s560_s13), 1 }
   0xe   : > { %s575_s22 = sshll.u32 %s957_s13, 8 }
   0xf   : > { %s680_s25 = scalar_lea.vmem %s952_s0, %s575_s22  ;;  %s851_s30 = scalar_lea.vmem %s955_s3, %s575_s22 }
  0x10   : > { %v683_v8 = vld [vmem:[%s680_s25] sm:$0xff]  ;;  %v686_v9 = vld [vmem:[%s680_s25 + $0x8] sm:$0xff]  ;;  %v689_v10 = vld [vmem:[%s680_s25 + $0x10] sm:$0xff] }
  0x11   : > { %v692_v11 = vld [vmem:[%s680_s25 + $0x18] sm:$0xff]  ;;  %v204_v12 = vsel %vm203_vm1, %v683_v8, 0.0  ;;  %v205_v13 = vsel %vm203_vm1, %v686_v9, 0.0  ;;  %v207_v14 = vsel %vm203_vm1, %v689_v10, 0.0  ;;  %v701_v15 = vld [vmem:[%s680_s25 + $0x20] sm:$0xff]  ;;  %v706_v18 = vld [vmem:[%s680_s25 + $0x28] sm:$0xff] }
  0x12   : > { %v206_v16 = vadd.f32 %v205_v13, %v204_v12  ;;  %v209_v17 = vsel %vm203_vm1, %v692_v11, 0.0  ;;  %v211_v20 = vsel %vm203_vm1, %v701_v15, 0.0  ;;  %v711_v21 = vld [vmem:[%s680_s25 + $0x30] sm:$0xff]  ;;  %v213_v23 = vsel %vm203_vm1, %v706_v18, 0.0  ;;  %v716_v24 = vld [vmem:[%s680_s25 + $0x38] sm:$0xff]  ;;  %v721_v27 = vld [vmem:[%s680_s25 + $0x40] sm:$0xff] }
  0x13   : > { %v215_v26 = vsel %vm203_vm1, %v711_v21, 0.0  ;;  %v217_v29 = vsel %vm203_vm1, %v716_v24, 0.0  ;;  %v726_v30 = vld [vmem:[%s680_s25 + $0x48] sm:$0xff]  ;;  %v219_v32 = vsel %vm203_vm1, %v721_v27, 0.0  ;;  %v731_v33 = vld [vmem:[%s680_s25 + $0x50] sm:$0xff]  ;;  %v736_v36 = vld [vmem:[%s680_s25 + $0x58] sm:$0xff] }
  0x14   : > { %v208_v19 = vadd.f32 %v207_v14, %v206_v16  ;;  %v221_v35 = vsel %vm203_vm1, %v726_v30, 0.0  ;;  %v223_v38 = vsel %vm203_vm1, %v731_v33, 0.0  ;;  %v741_v39 = vld [vmem:[%s680_s25 + $0x60] sm:$0xff]  ;;  %v225_v41 = vsel %vm203_vm1, %v736_v36, 0.0  ;;  %v746_v42 = vld [vmem:[%s680_s25 + $0x68] sm:$0xff]  ;;  %v751_v45 = vld [vmem:[%s680_s25 + $0x70] sm:$0xff] }
  0x15   : > { %v227_v44 = vsel %vm203_vm1, %v741_v39, 0.0  ;;  %v229_v47 = vsel %vm203_vm1, %v746_v42, 0.0  ;;  %v756_v48 = vld [vmem:[%s680_s25 + $0x78] sm:$0xff]  ;;  %v231_v50 = vsel %vm203_vm1, %v751_v45, 0.0  ;;  %v761_v51 = vld [vmem:[%s680_s25 + $0x80] sm:$0xff]  ;;  %v766_v54 = vld [vmem:[%s680_s25 + $0x88] sm:$0xff] }
  0x16   : > { %v210_v22 = vadd.f32 %v209_v17, %v208_v19  ;;  %v233_v53 = vsel %vm203_vm1, %v756_v48, 0.0  ;;  %v235_v56 = vsel %vm203_vm1, %v761_v51, 0.0  ;;  %v771_v57 = vld [vmem:[%s680_s25 + $0x90] sm:$0xff]  ;;  %v237_v59 = vsel %vm203_vm1, %v766_v54, 0.0  ;;  %v776_v60 = vld [vmem:[%s680_s25 + $0x98] sm:$0xff]  ;;  %v781_v63 = vld [vmem:[%s680_s25 + $0xa0] sm:$0xff] }
  0x17   : > { %v239_v62 = vsel %vm203_vm1, %v771_v57, 0.0  ;;  %v241_v1 = vsel %vm203_vm1, %v776_v60, 0.0  ;;  %v786_v2 = vld [vmem:[%s680_s25 + $0xa8] sm:$0xff]  ;;  %v243_v4 = vsel %vm203_vm1, %v781_v63, 0.0  ;;  %v791_v5 = vld [vmem:[%s680_s25 + $0xb0] sm:$0xff]  ;;  %v796_v12 = vld [vmem:[%s680_s25 + $0xb8] sm:$0xff] }
  0x18   : > { %v212_v25 = vadd.f32 %v211_v20, %v210_v22  ;;  %v245_v7 = vsel %vm203_vm1, %v786_v2, 0.0  ;;  %v247_v14 = vsel %vm203_vm1, %v791_v5, 0.0  ;;  %v801_v16 = vld [vmem:[%s680_s25 + $0xc0] sm:$0xff]  ;;  %v249_v19 = vsel %vm203_vm1, %v796_v12, 0.0  ;;  %v806_v20 = vld [vmem:[%s680_s25 + $0xc8] sm:$0xff] }
  0x1a   : > { %v214_v28 = vadd.f32 %v213_v23, %v212_v25  ;;  %v251_v23 = vsel %vm203_vm1, %v801_v16, 0.0  ;;  %v811_v25 = vld [vmem:[%s680_s25 + $0xd0] sm:$0xff] }
  0x1c   : > { %v216_v31 = vadd.f32 %v215_v26, %v214_v28  ;;  %v253_v28 = vsel %vm203_vm1, %v806_v20, 0.0 }
  0x1e   : > { %v218_v34 = vadd.f32 %v217_v29, %v216_v31  ;;  %v816_v29 = vld [vmem:[%s680_s25 + $0xd8] sm:$0xff] }
  0x20   : > { %v220_v37 = vadd.f32 %v219_v32, %v218_v34  ;;  %v255_v32 = vsel %vm203_vm1, %v811_v25, 0.0  ;;  %v821_v34 = vld [vmem:[%s680_s25 + $0xe0] sm:$0xff] }
  0x22   : > { %v222_v40 = vadd.f32 %v221_v35, %v220_v37  ;;  %v257_v37 = vsel %vm203_vm1, %v816_v29, 0.0 }
  0x24   : > { %v224_v43 = vadd.f32 %v223_v38, %v222_v40  ;;  %v826_v38 = vld [vmem:[%s680_s25 + $0xe8] sm:$0xff] }
  0x26   : > { %v226_v46 = vadd.f32 %v225_v41, %v224_v43  ;;  %v259_v41 = vsel %vm203_vm1, %v821_v34, 0.0  ;;  %v831_v43 = vld [vmem:[%s680_s25 + $0xf0] sm:$0xff] }
  0x28   : > { %v228_v49 = vadd.f32 %v227_v44, %v226_v46  ;;  %v261_v46 = vsel %vm203_vm1, %v826_v38, 0.0 }
  0x2a   : > { %v230_v52 = vadd.f32 %v229_v47, %v228_v49  ;;  %v836_v47 = vld [vmem:[%s680_s25 + $0xf8] sm:$0xff] }
  0x2c   : > { %v232_v55 = vadd.f32 %v231_v50, %v230_v52  ;;  %v263_v50 = vsel %vm203_vm1, %v831_v43, 0.0 }
  0x2e   : > { %v234_v58 = vadd.f32 %v233_v53, %v232_v55  ;;  %v265_v53 = vsel %vm203_vm1, %v836_v47, 0.0 }
  0x30   : > { %v236_v61 = vadd.f32 %v235_v56, %v234_v58 }
  0x32   : > { %v238_v0 = vadd.f32 %v237_v59, %v236_v61 }
  0x34   : > { %v240_v3 = vadd.f32 %v239_v62, %v238_v0 }
  0x36   : > { %v242_v6 = vadd.f32 %v241_v1, %v240_v3 }
  0x38   : > { %v244_v13 = vadd.f32 %v243_v4, %v242_v6  ;;  %v352_v4 = vld [vmem:[%s954_s2] sm:$0x3] }
  0x39   : > { %596 = vmatpush3.msk.msra.mxu1 %vm357_vm2, %v352_v4 }
  0x3a   : > { %v246_v17 = vadd.f32 %v245_v7, %v244_v13 }
  0x3c   : > { %v248_v22 = vadd.f32 %v247_v14, %v246_v17 }
  0x3e   : > { %v250_v26 = vadd.f32 %v249_v19, %v248_v22 }
  0x40   : > { %v252_v31 = vadd.f32 %v251_v23, %v250_v26  ;;  %v437_v26 = vlaneseq }
  0x42   : > { %v254_v35 = vadd.f32 %v253_v28, %v252_v31  ;;  %v438_v28 = vshrl.u32 %v437_v26, 7 }
  0x44   : > { %v256_v40 = vadd.f32 %v255_v32, %v254_v35  ;;  %v439_v31 = vsub.s32 0, %v438_v28 }
  0x46   : > { %v258_v44 = vadd.f32 %v257_v37, %v256_v40 }
  0x48   : > { %v260_v49 = vadd.f32 %v259_v41, %v258_v44 }
  0x4a   : > { %v262_v52 = vadd.f32 %v261_v46, %v260_v49 }
  0x4c   : > { %v264_v55 = vadd.f32 %v263_v50, %v262_v52 }
  0x4e   : > { %v266_v56 = vadd.f32 %v265_v53, %v264_v55 }
  0x50   : > { %v267_v58 = vrot.slane %v266_v56, 4 }
  0x52   : > { %v268_v59 = vadd.f32 %v267_v58, %v266_v56 }
  0x54   : > { %v269_v61 = vrot.slane %v268_v59, 2 }
  0x56   : > { %v270_v62 = vadd.f32 %v269_v61, %v268_v59 }
  0x58   : > { %v271_v0 = vrot.slane %v270_v62, 1 }
  0x5a   : > { %v272_v1 = vadd.f32 %v271_v0, %v270_v62 }
  0x5c   : > { %v273_v3 = vmul.f32 0.00390625, %v272_v1 }
  0x5e   : > { %593 = vmatmul.mubr.msk.f32.vlgmr.msra.gmra.mrb[0].mxu0 %vm203_vm1, %v273_v3 }
 0x131   : > { %v347_v6 = vpop.f32.mrb[0].mxu0 }
 0x132   : > { %v351_v7 = vmax.f32 %v347_v6, 0.0  ;;  %v594_v13 = vpop.f32.mrb[1].mxu0 }
 0x134   : > { %598 = vmatmul.mubr.msk.f32.vlgmr.msra.gmra.mrb[0].mxu1 %vm353_vm3, %v351_v7 }
 0x207   : > { %v427_v14 = vpop.f32.mrb[0].mxu1 }
 0x208   : > { %v572_v17 = vmul.f32 -1.442695, %v427_v14  ;;  %v599_v19 = vpop.f32.mrb[1].mxu1 }
 0x20a   : > { %617 = vpow2.f32 %v572_v17 }
 0x214   : > { %v618_v22 = vpop.eup %617 }
 0x215   : > { %v434_v23 = vadd.f32 1.0, %v618_v22 }
 0x217   : > { %619 = vrcp.f32 %v434_v23 }
 0x221   : > { %v620_v32 = vpop.eup %619 }
 0x222   : > { %v440_v35 = vrot.slane %v620_v32, %v439_v31 }
 0x224   : > { %v441_v37 = vmul.f32 %v440_v35, %v683_v8  ;;  %v442_v40 = vmul.f32 %v440_v35, %v686_v9  ;;  %v443_v41 = vmul.f32 %v440_v35, %v689_v10  ;;  %v444_v44 = vmul.f32 %v440_v35, %v692_v11 }
 0x225   : > { %v445_v46 = vmul.f32 %v440_v35, %v701_v15  ;;  %v446_v49 = vmul.f32 %v440_v35, %v706_v18  ;;  %v447_v50 = vmul.f32 %v440_v35, %v711_v21  ;;  %v448_v52 = vmul.f32 %v440_v35, %v716_v24 }
 0x226   : > { %v449_v8 = vmul.f32 %v440_v35, %v721_v27  ;;  %v450_v9 = vmul.f32 %v440_v35, %v726_v30  ;;  %v451_v10 = vmul.f32 %v440_v35, %v731_v33  ;;  %v452_v11 = vmul.f32 %v440_v35, %v736_v36  ;;  %473 = vst.msk [vmem:[%s851_s30] sm:$0xff] %vm203_vm1, %v441_v37 }
 0x227   : > { %474 = vst.msk [vmem:[%s851_s30 + $0x8] sm:$0xff] %vm203_vm1, %v442_v40  ;;  %475 = vst.msk [vmem:[%s851_s30 + $0x10] sm:$0xff] %vm203_vm1, %v443_v41  ;;  %v453_v15 = vmul.f32 %v440_v35, %v741_v39  ;;  %v454_v18 = vmul.f32 %v440_v35, %v746_v42  ;;  %v455_v21 = vmul.f32 %v440_v35, %v751_v45 }
 0x228   : > { %476 = vst.msk [vmem:[%s851_s30 + $0x18] sm:$0xff] %vm203_vm1, %v444_v44  ;;  %v456_v24 = vmul.f32 %v440_v35, %v756_v48  ;;  %477 = vst.msk [vmem:[%s851_s30 + $0x20] sm:$0xff] %vm203_vm1, %v445_v46  ;;  %v457_v27 = vmul.f32 %v440_v35, %v761_v51  ;;  %v458_v30 = vmul.f32 %v440_v35, %v766_v54 }
 0x229   : > { %478 = vst.msk [vmem:[%s851_s30 + $0x28] sm:$0xff] %vm203_vm1, %v446_v49  ;;  %479 = vst.msk [vmem:[%s851_s30 + $0x30] sm:$0xff] %vm203_vm1, %v447_v50  ;;  %v459_v33 = vmul.f32 %v440_v35, %v771_v57  ;;  %v460_v36 = vmul.f32 %v440_v35, %v776_v60  ;;  %v461_v39 = vmul.f32 %v440_v35, %v781_v63 }
 0x22a   : > { %480 = vst.msk [vmem:[%s851_s30 + $0x38] sm:$0xff] %vm203_vm1, %v448_v52  ;;  %481 = vst.msk [vmem:[%s851_s30 + $0x40] sm:$0xff] %vm203_vm1, %v449_v8  ;;  %v462_v42 = vmul.f32 %v440_v35, %v786_v2  ;;  %v463_v45 = vmul.f32 %v440_v35, %v791_v5  ;;  %v464_v48 = vmul.f32 %v440_v35, %v796_v12 }
 0x22b   : > { %482 = vst.msk [vmem:[%s851_s30 + $0x48] sm:$0xff] %vm203_vm1, %v450_v9  ;;  %483 = vst.msk [vmem:[%s851_s30 + $0x50] sm:$0xff] %vm203_vm1, %v451_v10  ;;  %v465_v51 = vmul.f32 %v440_v35, %v801_v16  ;;  %v466_v54 = vmul.f32 %v440_v35, %v806_v20  ;;  %v467_v57 = vmul.f32 %v440_v35, %v811_v25 }
 0x22c   : > { %484 = vst.msk [vmem:[%s851_s30 + $0x58] sm:$0xff] %vm203_vm1, %v452_v11  ;;  %485 = vst.msk [vmem:[%s851_s30 + $0x60] sm:$0xff] %vm203_vm1, %v453_v15  ;;  %v468_v60 = vmul.f32 %v440_v35, %v816_v29  ;;  %v469_v63 = vmul.f32 %v440_v35, %v821_v34  ;;  %v470_v2 = vmul.f32 %v440_v35, %v826_v38 }
 0x22d   : > { %486 = vst.msk [vmem:[%s851_s30 + $0x68] sm:$0xff] %vm203_vm1, %v454_v18  ;;  %487 = vst.msk [vmem:[%s851_s30 + $0x70] sm:$0xff] %vm203_vm1, %v455_v21  ;;  %v471_v5 = vmul.f32 %v440_v35, %v831_v43  ;;  %v472_v12 = vmul.f32 %v440_v35, %v836_v47 }
 0x22e   : > { %488 = vst.msk [vmem:[%s851_s30 + $0x78] sm:$0xff] %vm203_vm1, %v456_v24  ;;  %489 = vst.msk [vmem:[%s851_s30 + $0x80] sm:$0xff] %vm203_vm1, %v457_v27 }
 0x22f   : > { %490 = vst.msk [vmem:[%s851_s30 + $0x88] sm:$0xff] %vm203_vm1, %v458_v30  ;;  %491 = vst.msk [vmem:[%s851_s30 + $0x90] sm:$0xff] %vm203_vm1, %v459_v33 }
 0x230   : > { %492 = vst.msk [vmem:[%s851_s30 + $0x98] sm:$0xff] %vm203_vm1, %v460_v36  ;;  %493 = vst.msk [vmem:[%s851_s30 + $0xa0] sm:$0xff] %vm203_vm1, %v461_v39 }
 0x231   : > { %494 = vst.msk [vmem:[%s851_s30 + $0xa8] sm:$0xff] %vm203_vm1, %v462_v42  ;;  %495 = vst.msk [vmem:[%s851_s30 + $0xb0] sm:$0xff] %vm203_vm1, %v463_v45 }
 0x232   : > { %496 = vst.msk [vmem:[%s851_s30 + $0xb8] sm:$0xff] %vm203_vm1, %v464_v48  ;;  %497 = vst.msk [vmem:[%s851_s30 + $0xc0] sm:$0xff] %vm203_vm1, %v465_v51 }
 0x233   : > { %498 = vst.msk [vmem:[%s851_s30 + $0xc8] sm:$0xff] %vm203_vm1, %v466_v54  ;;  %499 = vst.msk [vmem:[%s851_s30 + $0xd0] sm:$0xff] %vm203_vm1, %v467_v57 }
 0x234   : > { %500 = vst.msk [vmem:[%s851_s30 + $0xd8] sm:$0xff] %vm203_vm1, %v468_v60  ;;  %501 = vst.msk [vmem:[%s851_s30 + $0xe0] sm:$0xff] %vm203_vm1, %v469_v63 }
 0x235   : > { %502 = vst.msk [vmem:[%s851_s30 + $0xe8] sm:$0xff] %vm203_vm1, %v470_v2  ;;  %503 = vst.msk [vmem:[%s851_s30 + $0xf0] sm:$0xff] %vm203_vm1, %v471_v5 }
 0x236   : > { %504 = vst.msk [vmem:[%s851_s30 + $0xf8] sm:$0xff] %vm203_vm1, %v472_v12 }
 0x237 PF: > { %s13_s12 = sadd.s32 1, %s627_s12  }
 0x238   : > { %p10_p4 = scmp.ge.s32.totalorder %s13_s12, 4  }
 0x23a   :  { %12 = sbr.rel (!%p10_p4) target bundleno = 1 (0x1), region = 62 }

</bundles_post_ra>
